<compile_context>
chip_gen: v7x
topology: tpu7x:2x2x1
jax: 0.10.0
libtpu: 0.0.40
codegen_flags: <defaults>
</compile_context>

<pallas_src>
import functools

import jax
import jax.numpy as jnp
from jax.experimental import pallas as pl
from jax.experimental.pallas import tpu as pltpu


def _cdiv(a, b):
    return -(-a // b)


def _round_up(a, m):
    return _cdiv(a, m) * m


def _tile_bytes(rows, cols, dtype):
    """VMEM footprint of a (rows, cols) tile after (sublane, 128-lane) padding."""
    item = jnp.dtype(dtype).itemsize
    sublane = 8 * max(1, 4 // item)          # 8 for f32, 16 for bf16, 32 for i8
    r = _round_up(max(int(rows), 1), sublane)
    c = _round_up(max(int(cols), 1), 128)
    return r * c * item


def _mlp_kernel(num_layers, compute_dtype, *refs):
    """refs = (x_ref, w0, b0, w1, b1, ..., wL, bL, o_ref).

    One whole row-tile per grid step; weights/biases are fully VMEM-resident.
    """
    x_ref = refs[0]
    o_ref = refs[-1]
    wb = refs[1:-1]

    # Cast inside the kernel (f32 -> bf16): no separate wrapper-side astype
    # pass over x in HBM.  If the caller already passes bf16 this is a no-op
    # and the HBM read traffic is halved.
    h = x_ref[...].astype(compute_dtype)
    for layer in range(num_layers):
        w = wb[2 * layer][...]                           # (K, N) compute dtype
        b = wb[2 * layer + 1][...]                       # (1, N) float32
        acc = jnp.dot(h, w, preferred_element_type=jnp.float32) + b
        if layer < num_layers - 1:
            # ReLU on all but the last layer, then back to bf16 for the MXU.
            h = jnp.maximum(acc, 0.0).astype(compute_dtype)
        else:
            o_ref[...] = acc.astype(o_ref.dtype)


def mlp_refiner_pallas(x, weights, biases, *, pack_rows=8, block_rows=2048,
                       compute_dtype=jnp.bfloat16, out_dtype=None):
    """Apply the MLP to x (..., in_dim) -> (..., out_dim).

    pack_rows: rows packed per lane-row (block-diagonal weight trick).
               8 fills the 256-wide MXU contraction on v6e/v7x; use 4 on v5e.
    block_rows: packed rows per grid step (default 2048 = 16384 raw rows).
    out_dtype: output dtype (defaults to x.dtype; pass jnp.bfloat16 to halve
               the write stream if downstream tolerates it).
    """
    in_dim = x.shape[-1]
    lead_shape = x.shape[:-1]
    out_dim = weights[-1].shape[1]
    num_layers = len(weights)
    out_dtype = x.dtype if out_dtype is None else out_dtype

    n_rows = 1
    for d in lead_shape:
        n_rows *= int(d)
    n_rows = max(n_rows, 1)
    R = max(1, int(pack_rows))

    x_flat = x.reshape(n_rows, in_dim)
    n_pad = _round_up(n_rows, R)
    if n_pad != n_rows:
        # Only copies x when the row count is not already a multiple of R
        # (pads with zeros; those rows are sliced off at the end).
        x_flat = jnp.pad(x_flat, ((0, n_pad - n_rows), (0, 0)))
    rows_packed = n_pad // R
    # Free row-major view: (n_pad, in_dim) -> (n_pad/R, R*in_dim).
    x_packed = x_flat.reshape(rows_packed, R * in_dim)

    # Block-diagonal packed weights (compute dtype) and tiled biases (f32).
    # kron(I_R, W) keeps each packed row's math identical to W @ x_row: the
    # off-diagonal blocks are exact zeros.
    ws_p = [jnp.kron(jnp.eye(R, dtype=w.dtype), w).astype(compute_dtype)
            for w in weights]
    bs_p = [jnp.tile(b.reshape(1, -1).astype(jnp.float32), (1, R))
            for b in biases]

    packed_in = R * in_dim
    packed_out = R * out_dim

    # Row tile: big enough to amortize per-step overhead; keep >= 2 grid
    # steps when there is enough work so megacore can use both TensorCores.
    block_rows = max(8, (int(block_rows) // 8) * 8)
    if rows_packed <= 8:
        block_rows_eff = rows_packed          # single full-extent block
    else:
        half = _round_up(_cdiv(rows_packed, 2), 8)
        block_rows_eff = max(8, min(block_rows, half))

    def vmem_estimate(rows):
        io = 2 * (_tile_bytes(rows, packed_in, x.dtype)
                  + _tile_bytes(rows, packed_out, out_dtype))
        wb = 2 * sum(_tile_bytes(w.shape[0], w.shape[1], w.dtype) for w in ws_p)
        wb += 2 * sum(_tile_bytes(1, b.shape[1], b.dtype) for b in bs_p)
        widest = max([packed_in, packed_out] + [w.shape[1] for w in ws_p])
        live = (2 * _tile_bytes(rows, widest, jnp.float32)
                + _tile_bytes(rows, widest, compute_dtype))
        return io + wb + live

    VMEM_CAP = 48 * 2 ** 20                   # well under v7x's 64 MiB physical
    while block_rows_eff > 8 and vmem_estimate(block_rows_eff) > VMEM_CAP:
        block_rows_eff = max(8, _round_up(block_rows_eff // 2, 8))

    grid = (_cdiv(rows_packed, block_rows_eff),)
    vmem_limit = int(min(max(1.3 * vmem_estimate(block_rows_eff), 16 * 2 ** 20),
                         VMEM_CAP))

    # BlockSpecs: tile packed rows of x / out; weights & biases fully resident
    # (constant index_map -> never re-DMA'd across grid steps).
    # TODO(synk): pipeline_mode=pl.Buffered(1) on the weight/bias specs would
    # drop their second VMEM buffer (~1 MiB); skipped to keep lowering simple.
    in_specs = [pl.BlockSpec((block_rows_eff, packed_in), lambda i: (i, 0))]
    for w, b in zip(ws_p, bs_p):
        in_specs.append(pl.BlockSpec(w.shape, lambda i: (0, 0)))
        in_specs.append(pl.BlockSpec(b.shape, lambda i: (0, 0)))
    out_spec = pl.BlockSpec((block_rows_eff, packed_out), lambda i: (i, 0))

    kernel = functools.partial(_mlp_kernel, num_layers, compute_dtype)

    wb_flat = []
    for w, b in zip(ws_p, bs_p):
        wb_flat += [w, b]

    y_packed = pl.pallas_call(
        kernel,
        out_shape=jax.ShapeDtypeStruct((rows_packed, packed_out), out_dtype),
        grid_spec=pltpu.PrefetchScalarGridSpec(
            num_scalar_prefetch=0,
            grid=grid,
            in_specs=in_specs,
            out_specs=out_spec,
        ),
        compiler_params=pltpu.CompilerParams(
            dimension_semantics=("parallel",),
            vmem_limit_bytes=vmem_limit,
        ),
    )(x_packed, *wb_flat)

    # Free row-major view back to (n_pad, out_dim); slice off pad rows if any.
    y_flat = y_packed.reshape(n_pad, out_dim)
    if n_pad != n_rows:
        y_flat = y_flat[:n_rows]
    return y_flat.reshape(*lead_shape, out_dim)


def init_mlp_params(key, in_dim, out_dim, hidden_list, dtype=jnp.float32):
    """Deterministic nn.Linear-style init: U(-1/sqrt(fan_in), 1/sqrt(fan_in))."""
    dims = [in_dim] + list(hidden_list) + [out_dim]
    weights, biases = [], []
    for i in range(len(dims) - 1):
        fan_in, fan_out = dims[i], dims[i + 1]
        key, kw, kb = jax.random.split(key, 3)
        bound = 1.0 / (fan_in ** 0.5)
        # stored as (in_features, out_features) for row-major matmul
        w = jax.random.uniform(kw, (fan_in, fan_out), dtype, -bound, bound)
        b = jax.random.uniform(kb, (1, fan_out), dtype, -bound, bound)
        weights.append(w)
        biases.append(b)
    return weights, biases


def mlp_refiner_reference(x, weights, biases, compute_dtype=None):
    """Pure-JAX reference. compute_dtype=bf16 mirrors the kernel's cast points."""
    shape = x.shape[:-1]
    h = x.reshape(-1, x.shape[-1])
    h = h.astype(compute_dtype if compute_dtype is not None else jnp.float32)
    for i, (w, b) in enumerate(zip(weights, biases)):
        w_c = w.astype(compute_dtype if compute_dtype is not None else jnp.float32)
        h = jnp.dot(h, w_c, preferred_element_type=jnp.float32)
        h = h + b.reshape(1, -1).astype(jnp.float32)
        if i < len(weights) - 1:
            h = jnp.maximum(h, 0.0)
            if compute_dtype is not None:
                h = h.astype(compute_dtype)
    return h.astype(x.dtype).reshape(*shape, -1)


if __name__ == "__main__":
    key = jax.random.PRNGKey(0)

    # Small LIIF-refiner-like config.
    in_dim, out_dim, hidden_list = 32, 16, [64, 64]

    key, kx, kp = jax.random.split(key, 3)
    weights, biases = init_mlp_params(kp, in_dim, out_dim, hidden_list)

    # Case 1: tiny input (batch=2, seq=8) -> 2 packed rows, single grid step.
    x_small = jax.random.normal(kx, (2, 8, in_dim), dtype=jnp.float32)
    y_small = jax.block_until_ready(mlp_refiner_pallas(x_small, weights, biases))
    assert y_small.shape == (2, 8, out_dim), y_small.shape

    # Case 2: row count not a multiple of pack_rows (1198 -> pad to 1200 ->
    # 150 packed rows), small block_rows -> multi-step grid with a partial
    # final block (handled by the pipeline, pad rows sliced off).
    key, kx2 = jax.random.split(key)
    x_big = jax.random.normal(kx2, (2, 599, in_dim), dtype=jnp.float32)
    y_big = jax.block_until_ready(
        mlp_refiner_pallas(x_big, weights, biases, block_rows=32))
    assert y_big.shape == (2, 599, out_dim), y_big.shape

    # Case 3: divisible row count (1024 rows -> 128 packed rows), default
    # block_rows -> exactly two grid steps (megacore-friendly).
    key, kx3 = jax.random.split(key)
    x_mid = jax.random.normal(kx3, (4, 256, in_dim), dtype=jnp.float32)
    y_mid = jax.block_until_ready(mlp_refiner_pallas(x_mid, weights, biases))
    assert y_mid.shape == (4, 256, out_dim), y_mid.shape

    for xv, yv in ((x_small, y_small), (x_big, y_big), (x_mid, y_mid)):
        # bf16-matched reference (same cast points as the kernel).
        y_bf = mlp_refiner_reference(xv, weights, biases,
                                     compute_dtype=jnp.bfloat16)
        assert jnp.allclose(yv, y_bf, atol=2e-2, rtol=2e-2), "mismatch vs bf16 ref"
        # Full-f32 reference of the original PyTorch forward (loose tolerance
        # because the kernel runs the matmuls in bf16 with f32 accumulation).
        y_f32 = mlp_refiner_reference(xv, weights, biases)
        assert jnp.allclose(yv, y_f32, atol=1e-1, rtol=1e-1), "mismatch vs f32 ref"

    print("KERNEL_OK")
</pallas_src>

<mosaic_0001>
module attributes {stable_mosaic.version = 11 : i64} {
  func.func @_mlp_kernel(%arg0: i32, %arg1: memref<2x256xf32, #tpu.memory_space<vmem>>, %arg2: memref<256x512xbf16, #tpu.memory_space<vmem>>, %arg3: memref<1x512xf32, #tpu.memory_space<vmem>>, %arg4: memref<512x512xbf16, #tpu.memory_space<vmem>>, %arg5: memref<1x512xf32, #tpu.memory_space<vmem>>, %arg6: memref<512x128xbf16, #tpu.memory_space<vmem>>, %arg7: memref<1x128xf32, #tpu.memory_space<vmem>>, %arg8: memref<2x128xf32, #tpu.memory_space<vmem>>) attributes {dimension_semantics = [#tpu.dimension_semantics<parallel>], iteration_bounds = array<i64: 1>, scalar_prefetch = 0 : i64, scratch_operands = 0 : i64, tpu.core_type = #tpu.core_type<tc>, window_params = [{transform_indices = @transform_0, window_bounds = array<i64: 2, 256>}, {pipeline_mode = #tpu.pipeline_mode<synchronous>, transform_indices = @transform_1, window_bounds = array<i64: 256, 512>}, {pipeline_mode = #tpu.pipeline_mode<synchronous>, transform_indices = @transform_2, window_bounds = array<i64: 1, 512>}, {pipeline_mode = #tpu.pipeline_mode<synchronous>, transform_indices = @transform_3, window_bounds = array<i64: 512, 512>}, {pipeline_mode = #tpu.pipeline_mode<synchronous>, transform_indices = @transform_4, window_bounds = array<i64: 1, 512>}, {pipeline_mode = #tpu.pipeline_mode<synchronous>, transform_indices = @transform_5, window_bounds = array<i64: 512, 128>}, {pipeline_mode = #tpu.pipeline_mode<synchronous>, transform_indices = @transform_6, window_bounds = array<i64: 1, 128>}, {transform_indices = @transform_7, window_bounds = array<i64: 2, 128>}]} {
    %c0 = arith.constant 0 : index
    %c0_0 = arith.constant 0 : index
    %0 = vector.load %arg1[%c0, %c0_0] : memref<2x256xf32, #tpu.memory_space<vmem>>, vector<2x256xf32>
    %1 = arith.truncf %0 : vector<2x256xf32> to vector<2x256xbf16>
    %c0_1 = arith.constant 0 : index
    %c0_2 = arith.constant 0 : index
    %2 = vector.load %arg2[%c0_1, %c0_2] : memref<256x512xbf16, #tpu.memory_space<vmem>>, vector<256x512xbf16>
    %c0_3 = arith.constant 0 : index
    %c0_4 = arith.constant 0 : index
    %3 = vector.load %arg3[%c0_3, %c0_4] : memref<1x512xf32, #tpu.memory_space<vmem>>, vector<1x512xf32>
    %cst = arith.constant dense<0.000000e+00> : vector<2x512xf32>
    %4 = tpu.matmul %1, %2, %cst {dimension_numbers = #tpu.dot_dimension_numbers<[1], [0], [0], [1], [0, 0, 1, 1], [], []>} : vector<2x256xbf16>, vector<256x512xbf16>, vector<2x512xf32> -> vector<2x512xf32>
    %5 = vector.broadcast %3 : vector<1x512xf32> to vector<2x512xf32>
    %6 = arith.addf %4, %5 : vector<2x512xf32>
    %cst_5 = arith.constant 0.000000e+00 : f32
    %7 = vector.broadcast %cst_5 : f32 to vector<2x512xf32>
    %8 = arith.maximumf %6, %7 : vector<2x512xf32>
    %9 = arith.truncf %8 : vector<2x512xf32> to vector<2x512xbf16>
    %c0_6 = arith.constant 0 : index
    %c0_7 = arith.constant 0 : index
    %10 = vector.load %arg4[%c0_6, %c0_7] : memref<512x512xbf16, #tpu.memory_space<vmem>>, vector<512x512xbf16>
    %c0_8 = arith.constant 0 : index
    %c0_9 = arith.constant 0 : index
    %11 = vector.load %arg5[%c0_8, %c0_9] : memref<1x512xf32, #tpu.memory_space<vmem>>, vector<1x512xf32>
    %cst_10 = arith.constant dense<0.000000e+00> : vector<2x512xf32>
    %12 = tpu.matmul %9, %10, %cst_10 {dimension_numbers = #tpu.dot_dimension_numbers<[1], [0], [0], [1], [0, 0, 1, 1], [], []>} : vector<2x512xbf16>, vector<512x512xbf16>, vector<2x512xf32> -> vector<2x512xf32>
    %13 = vector.broadcast %11 : vector<1x512xf32> to vector<2x512xf32>
    %14 = arith.addf %12, %13 : vector<2x512xf32>
    %cst_11 = arith.constant 0.000000e+00 : f32
    %15 = vector.broadcast %cst_11 : f32 to vector<2x512xf32>
    %16 = arith.maximumf %14, %15 : vector<2x512xf32>
    %17 = arith.truncf %16 : vector<2x512xf32> to vector<2x512xbf16>
    %c0_12 = arith.constant 0 : index
    %c0_13 = arith.constant 0 : index
    %18 = vector.load %arg6[%c0_12, %c0_13] : memref<512x128xbf16, #tpu.memory_space<vmem>>, vector<512x128xbf16>
    %c0_14 = arith.constant 0 : index
    %c0_15 = arith.constant 0 : index
    %19 = vector.load %arg7[%c0_14, %c0_15] : memref<1x128xf32, #tpu.memory_space<vmem>>, vector<1x128xf32>
    %cst_16 = arith.constant dense<0.000000e+00> : vector<2x128xf32>
    %20 = tpu.matmul %17, %18, %cst_16 {dimension_numbers = #tpu.dot_dimension_numbers<[1], [0], [0], [1], [0, 0, 1, 1], [], []>} : vector<2x512xbf16>, vector<512x128xbf16>, vector<2x128xf32> -> vector<2x128xf32>
    %21 = vector.broadcast %19 : vector<1x128xf32> to vector<2x128xf32>
    %22 = arith.addf %20, %21 : vector<2x128xf32>
    %c0_17 = arith.constant 0 : index
    %c0_18 = arith.constant 0 : index
    %23 = vector.load %arg8[%c0_17, %c0_18] : memref<2x128xf32, #tpu.memory_space<vmem>>, vector<2x128xf32>
    tpu.vector_store %arg8[%c0_17, %c0_18], %22 {strides = array<i32>} : memref<2x128xf32, #tpu.memory_space<vmem>>, vector<2x128xf32>,
    return
  }
  func.func @transform_0(%arg0: i32) -> (i32, i32) {
    %c0_i32 = arith.constant 0 : i32
    %c0_i32_0 = arith.constant 0 : i32
    return %arg0, %c0_i32 : i32, i32
  }
  func.func @transform_1(%arg0: i32) -> (i32, i32) {
    %c0_i32 = arith.constant 0 : i32
    %c0_i32_0 = arith.constant 0 : i32
    %c0_i32_1 = arith.constant 0 : i32
    return %c0_i32, %c0_i32_0 : i32, i32
  }
  func.func @transform_2(%arg0: i32) -> (i32, i32) {
    %c0_i32 = arith.constant 0 : i32
    %c0_i32_0 = arith.constant 0 : i32
    %c0_i32_1 = arith.constant 0 : i32
    return %c0_i32, %c0_i32_0 : i32, i32
  }
  func.func @transform_3(%arg0: i32) -> (i32, i32) {
    %c0_i32 = arith.constant 0 : i32
    %c0_i32_0 = arith.constant 0 : i32
    %c0_i32_1 = arith.constant 0 : i32
    return %c0_i32, %c0_i32_0 : i32, i32
  }
  func.func @transform_4(%arg0: i32) -> (i32, i32) {
    %c0_i32 = arith.constant 0 : i32
    %c0_i32_0 = arith.constant 0 : i32
    %c0_i32_1 = arith.constant 0 : i32
    return %c0_i32, %c0_i32_0 : i32, i32
  }
  func.func @transform_5(%arg0: i32) -> (i32, i32) {
    %c0_i32 = arith.constant 0 : i32
    %c0_i32_0 = arith.constant 0 : i32
    %c0_i32_1 = arith.constant 0 : i32
    return %c0_i32, %c0_i32_0 : i32, i32
  }
  func.func @transform_6(%arg0: i32) -> (i32, i32) {
    %c0_i32 = arith.constant 0 : i32
    %c0_i32_0 = arith.constant 0 : i32
    %c0_i32_1 = arith.constant 0 : i32
    return %c0_i32, %c0_i32_0 : i32, i32
  }
  func.func @transform_7(%arg0: i32) -> (i32, i32) {
    %c0_i32 = arith.constant 0 : i32
    %c0_i32_0 = arith.constant 0 : i32
    return %arg0, %c0_i32 : i32, i32
  }
}

</mosaic_0001>

<bundles_post_ra>
// kernel: tpu_custom_call.1
= control target key start
LH: loop header
LB: loop body
LE: loop exit
PB: predicated region body
PF: predicated region fallthrough
CT: control target
= control target key end

     0   :  { %12 = vsyncpa [#allocation3], 0  ;;  %s2804_s0 = inlined_call_operand.hbm [shape: f32[2,256], index: 0, kind: input, shape index: {}]   ;;  %s2805_s1 = inlined_call_operand.hbm [shape: bf16[256,512], index: 1, kind: input, shape index: {}]   ;;  %s2806_s2 = inlined_call_operand.vmem [shape: f32[1,512], index: 2, kind: input, shape index: {}]   ;;  %s2807_s3 = inlined_call_operand.hbm [shape: bf16[512,512], index: 3, kind: input, shape index: {}]   ;;  %s2808_s4 = inlined_call_operand.vmem [shape: f32[1,512], index: 4, kind: input, shape index: {}]   ;;  %s2809_s5 = inlined_call_operand.hbm [shape: bf16[512,128], index: 5, kind: input, shape index: {}]   ;;  %s2810_s6 = inlined_call_operand.vmem [shape: f32[1,128], index: 6, kind: input, shape index: {}]   ;;  %s2811_s7 = inlined_call_operand.hbm [shape: f32[2,128], index: 7, kind: output, shape index: {}]  }
   0x1   :  { %13 = vsyncpa [#allocation6], 0 }
   0x2   :  { %14 = vsyncpa [#allocation9], 0 }
   0x3   :  { %15 = vsyncpa [#allocation4], 0  ;;  %s2643_s24 = smov [#allocation5]   ;;  %s2525_s28 = scalar_lea.hbm %s2805_s1, 8192 }
   0x4   :  { %s31_s25 = sshll.u32 %s2643_s24, 4  ;;  %p2526_p0 = scmp.ne.s32.totalorder %s2805_s1, %s2525_s28  ;;  %s32_s25 = int_to_ptr.vmem [resolvable:$true] %s31_s25 }
   0x5   :  { %p2529_p1 = scmp.lt.u32.totalorder %s2525_s28, %s2805_s1 }
   0x7   :  { %p2531_p2 = pnand %p2529_p1, %p2526_p0 }
   0x9   :  { %2534 = shalt.err (!%p2531_p2)
}
   0xa   :  { %s2535_s10 = scalar_lea.vmem %s32_s25, 8192  ;;  %p2540_p4 = scmp.lt.s32.totalorder %s32_s25, %s32_s25 }
   0xb   :  { %p2536_p3 = scmp.ne.s32.totalorder %s32_s25, %s2535_s10  ;;  %p2541_p5 = scmp.lt.s32.totalorder %s2535_s10, %s2535_s10 }
   0xd   :  { %p2542_p6 = por %p2541_p5, %p2540_p4 }
   0xf   :  { %p2543_p7 = pnand %p2542_p6, %p2536_p3 }
  0x11   :  { %2546 = shalt.err (!%p2543_p7)
}
  0x12   :  { %s2644_s11 = smov 256   ;;  %s2645_s12 = smov 16  }
  0x13   :  { %37 = dma.hbm_to_vmem [thread:$0]  %s2805_s1, 8192, %s32_s25, [#allocation6], %s2644_s11, %s2644_s11, %s2645_s12  }
  0x14   :  { %s2646_s15 = smov [#allocation2]   ;;  %s2647_s17 = smov [#allocation7]  }
  0x15   :  { %s22_s16 = sshll.u32 %s2646_s15, 4  ;;  %s45_s18 = sshll.u32 %s2647_s17, 4  ;;  %s23_s16 = int_to_ptr.vmem [resolvable:$true] %s22_s16  ;;  %s46_s18 = int_to_ptr.vmem [resolvable:$true] %s45_s18 }
  0x16   :  { %s2547_s21 = scalar_lea.hbm %s2804_s0, 64 }
  0x17   :  { %p2548_p8 = scmp.ne.s32.totalorder %s2804_s0, %s2547_s21  ;;  %p2551_p9 = scmp.lt.u32.totalorder %s2547_s21, %s2804_s0 }
  0x19   :  { %p2553_p10 = pnand %p2551_p9, %p2548_p8 }
  0x1b   :  { %2556 = shalt.err (!%p2553_p10)
}
  0x1c   :  { %s2557_s1 = scalar_lea.vmem %s23_s16, 64  ;;  %p2562_p12 = scmp.lt.s32.totalorder %s23_s16, %s23_s16 }
  0x1d   :  { %p2558_p11 = scmp.ne.s32.totalorder %s23_s16, %s2557_s1  ;;  %p2563_p13 = scmp.lt.s32.totalorder %s2557_s1, %s2557_s1 }
  0x1f   :  { %p2564_p0 = por %p2563_p13, %p2562_p12 }
  0x21   :  { %p2565_p1 = pnand %p2564_p0, %p2558_p11 }
  0x23   :  { %2568 = shalt.err (!%p2565_p1)
}
  0x24   :  { %25 = dma.hbm_to_vmem [thread:$0]  %s2804_s0, 64, %s23_s16, [#allocation3]  }
  0x25   :  { %s2569_s30 = scalar_lea.hbm %s2807_s3, 16384 }
  0x26   :  { %p2570_p2 = scmp.ne.s32.totalorder %s2807_s3, %s2569_s30  ;;  %p2573_p3 = scmp.lt.u32.totalorder %s2569_s30, %s2807_s3 }
  0x28   :  { %p2575_p4 = pnand %p2573_p3, %p2570_p2 }
  0x2a   :  { %2578 = shalt.err (!%p2575_p4)
}
  0x2b   :  { %s2579_s14 = scalar_lea.vmem %s46_s18, 16384  ;;  %p2584_p6 = scmp.lt.s32.totalorder %s46_s18, %s46_s18 }
  0x2c   :  { %p2580_p5 = scmp.ne.s32.totalorder %s46_s18, %s2579_s14  ;;  %p2585_p7 = scmp.lt.s32.totalorder %s2579_s14, %s2579_s14 }
  0x2e   :  { %p2586_p8 = por %p2585_p7, %p2584_p6 }
  0x30   :  { %p2587_p9 = pnand %p2586_p8, %p2580_p5 }
  0x32   :  { %2590 = shalt.err (!%p2587_p9)
}
  0x33   :  { %51 = dma.hbm_to_vmem [thread:$0]  %s2807_s3, 16384, %s46_s18, [#allocation6], %s2644_s11, %s2644_s11, %s2645_s12  }
  0x34   :  { %s2648_s16 = smov [#allocation8]   ;;  %s2591_s21 = scalar_lea.hbm %s2809_s5, 4096 }
  0x35   :  { %s59_s17 = sshll.u32 %s2648_s16, 4  ;;  %p2592_p10 = scmp.ne.s32.totalorder %s2809_s5, %s2591_s21  ;;  %s60_s17 = int_to_ptr.vmem [resolvable:$true] %s59_s17 }
  0x36   :  { %p2595_p11 = scmp.lt.u32.totalorder %s2591_s21, %s2809_s5 }
  0x38   :  { %p2597_p12 = pnand %p2595_p11, %p2592_p10 }
  0x3a   :  { %2600 = shalt.err (!%p2597_p12)
}
  0x3b   :  { %s2601_s1 = scalar_lea.vmem %s60_s17, 4096  ;;  %p2606_p0 = scmp.lt.s32.totalorder %s60_s17, %s60_s17 }
  0x3c   :  { %p2602_p13 = scmp.ne.s32.totalorder %s60_s17, %s2601_s1  ;;  %p2607_p1 = scmp.lt.s32.totalorder %s2601_s1, %s2601_s1 }
  0x3e   :  { %p2608_p2 = por %p2607_p1, %p2606_p0 }
  0x40   :  { %p2609_p3 = pnand %p2608_p2, %p2602_p13 }
  0x42   :  { %2612 = shalt.err (!%p2609_p3)
}
  0x43   :  { %s2649_s3 = smov 64   ;;  %s2650_s11 = smov 4  }
  0x44   :  { %65 = dma.hbm_to_vmem [thread:$0]  %s2809_s5, 4096, %s60_s17, [#allocation9], %s2649_s3, %s2649_s3, %s2650_s11  }
  0x45   :  { %2635 = dma.done.wait [#allocation3], 64  }
  0x46   :  { %2636 = vsyncadd [#allocation3], 4294967232 }
  0x47   :  { %2637 = dma.done.wait [#allocation6], 24576  }
  0x48   :  { %2638 = vsyncadd [#allocation6], 4294942720 }
  0x49   :  { %2639 = dma.done.wait [#allocation9], 4096  }
  0x4a   :  { %2640 = vsyncadd [#allocation9], 4294963200  ;;  %v2205_v0 = vld [vmem:[#allocation5 + $0x4] ss:$16 sps:$4 sm:$0xff]   ;;  %v2207_v1 = vld [vmem:[#allocation5] ss:$16 sps:$4 sm:$0xff]  }
  0x4b   :  { %501 = vmatprep.subr.bf16.mxu0 %v2205_v0  ;;  %v2208_v2 = vld [vmem:[#allocation5 + $0x24] ss:$16 sps:$4 sm:$0xff]   ;;  %v2210_v3 = vld [vmem:[#allocation5 + $0x20] ss:$16 sps:$4 sm:$0xff]   ;;  %v2252_v13 = vld [vmem:[#allocation5 + $0xc] ss:$16 sps:$4 sm:$0xff]  }
  0x4c   :  { %502 = vmatpush1.bf16.msra.mxu0 %v2207_v1  ;;  %v2211_v4 = vld [vmem:[#allocation5 + $0x44] ss:$16 sps:$4 sm:$0xff]   ;;  %v2213_v5 = vld [vmem:[#allocation5 + $0x40] ss:$16 sps:$4 sm:$0xff]   ;;  %v2255_v15 = vld [vmem:[#allocation5 + $0x8] ss:$16 sps:$4 sm:$0xff]   ;;  %542 = vmatprep.subr.bf16.mxu1 %v2252_v13 }
  0x4d   :  { %503 = vmatprep.subr.bf16.mxu0 %v2208_v2  ;;  %v2214_v6 = vld [vmem:[#allocation5 + $0x64] ss:$16 sps:$4 sm:$0xff]   ;;  %v2216_v7 = vld [vmem:[#allocation5 + $0x60] ss:$16 sps:$4 sm:$0xff]   ;;  %543 = vmatpush1.bf16.msra.mxu1 %v2255_v15  ;;  %v2256_v19 = vld [vmem:[#allocation5 + $0x2c] ss:$16 sps:$4 sm:$0xff]  }
  0x4e   :  { %v2217_v8 = vld [vmem:[#allocation5 + $0x84] ss:$16 sps:$4 sm:$0xff]   ;;  %v2219_v9 = vld [vmem:[#allocation5 + $0x80] ss:$16 sps:$4 sm:$0xff]   ;;  %v2258_v20 = vld [vmem:[#allocation5 + $0x28] ss:$16 sps:$4 sm:$0xff]   ;;  %544 = vmatprep.subr.bf16.mxu1 %v2256_v19 }
  0x4f   :  { %v2220_v10 = vld [vmem:[#allocation5 + $0xa4] ss:$16 sps:$4 sm:$0xff]   ;;  %v2222_v11 = vld [vmem:[#allocation5 + $0xa0] ss:$16 sps:$4 sm:$0xff]   ;;  %v2259_v22 = vld [vmem:[#allocation5 + $0x4c] ss:$16 sps:$4 sm:$0xff]  }
  0x50   :  { %504 = vmatpush1.bf16.msra.mxu0 %v2210_v3  ;;  %v2223_v12 = vld [vmem:[#allocation5 + $0xc4] ss:$16 sps:$4 sm:$0xff]   ;;  %v2225_v14 = vld [vmem:[#allocation5 + $0xc0] ss:$16 sps:$4 sm:$0xff]   ;;  %v2261_v25 = vld [vmem:[#allocation5 + $0x48] ss:$16 sps:$4 sm:$0xff]  }
  0x51   :  { %505 = vmatprep.subr.bf16.mxu0 %v2211_v4  ;;  %v2746_v16 = vld.sshfl [vmem:[#allocation2] sm:$0x33 pattern:$0x76325410]  ;;  %v2226_v17 = vld [vmem:[#allocation5 + $0xe4] ss:$16 sps:$4 sm:$0xff]   ;;  %545 = vmatpush1.bf16.msra.mxu1 %v2258_v20 }
  0x52   :  { %v90_v18 = vcombine.high %v2746_v16, %v2746_v16  ;;  %v2228_v23 = vld [vmem:[#allocation5 + $0xe0] ss:$16 sps:$4 sm:$0xff]   ;;  %v2229_v24 = vld [vmem:[#allocation5 + $0x104] ss:$16 sps:$4 sm:$0xff]   ;;  %546 = vmatprep.subr.bf16.mxu1 %v2259_v22  ;;  %v2262_v26 = vld [vmem:[#allocation5 + $0x6c] ss:$16 sps:$4 sm:$0xff]   ;;  %v93_v58 = vpack.c.bf16 %v2746_v16, %v2746_v16 }
  0x53   :  { %v2231_v27 = vld [vmem:[#allocation5 + $0x100] ss:$16 sps:$4 sm:$0xff]   ;;  %v2232_v28 = vld [vmem:[#allocation5 + $0x124] ss:$16 sps:$4 sm:$0xff]   ;;  %v2264_v29 = vld [vmem:[#allocation5 + $0x68] ss:$16 sps:$4 sm:$0xff]  }
  0x54   :  { %506 = vmatpush1.bf16.msra.mxu0 %v2213_v5  ;;  %v94_v21 = vpack.c.bf16 %v90_v18, %v90_v18  ;;  %v2265_v30 = vld [vmem:[#allocation5 + $0x8c] ss:$16 sps:$4 sm:$0xff]   ;;  %v2234_v31 = vld [vmem:[#allocation5 + $0x120] ss:$16 sps:$4 sm:$0xff]   ;;  %v2235_v32 = vld [vmem:[#allocation5 + $0x144] ss:$16 sps:$4 sm:$0xff]  }
  0x55   :  { %507 = vmatprep.subr.bf16.mxu0 %v2214_v6  ;;  %547 = vmatpush1.bf16.msra.mxu1 %v2261_v25  ;;  %v2267_v33 = vld [vmem:[#allocation5 + $0x88] ss:$16 sps:$4 sm:$0xff]   ;;  %v2268_v34 = vld [vmem:[#allocation5 + $0xac] ss:$16 sps:$4 sm:$0xff]   ;;  %v2237_v35 = vld [vmem:[#allocation5 + $0x140] ss:$16 sps:$4 sm:$0xff]  }
  0x56   :  { %533 = vmatprep.mubr.bf16.mxu0 %v94_v21  ;;  %574 = vmatprep.mubr.bf16.mxu1 %v94_v21  ;;  %v2238_v36 = vld [vmem:[#allocation5 + $0x164] ss:$16 sps:$4 sm:$0xff]   ;;  %v2270_v37 = vld [vmem:[#allocation5 + $0xa8] ss:$16 sps:$4 sm:$0xff]   ;;  %v2271_v38 = vld [vmem:[#allocation5 + $0xcc] ss:$16 sps:$4 sm:$0xff]  }
  0x57   :  { %548 = vmatprep.subr.bf16.mxu1 %v2262_v26  ;;  %v2240_v39 = vld [vmem:[#allocation5 + $0x160] ss:$16 sps:$4 sm:$0xff]   ;;  %v2241_v40 = vld [vmem:[#allocation5 + $0x184] ss:$16 sps:$4 sm:$0xff]   ;;  %v2273_v41 = vld [vmem:[#allocation5 + $0xc8] ss:$16 sps:$4 sm:$0xff]  }
  0x58   :  { %508 = vmatpush1.bf16.msra.mxu0 %v2216_v7  ;;  %v2274_v42 = vld [vmem:[#allocation5 + $0xec] ss:$16 sps:$4 sm:$0xff]   ;;  %v2243_v43 = vld [vmem:[#allocation5 + $0x180] ss:$16 sps:$4 sm:$0xff]   ;;  %v2244_v44 = vld [vmem:[#allocation5 + $0x1a4] ss:$16 sps:$4 sm:$0xff]  }
  0x59   :  { %509 = vmatprep.subr.bf16.mxu0 %v2217_v8  ;;  %549 = vmatpush1.bf16.msra.mxu1 %v2264_v29  ;;  %v2276_v45 = vld [vmem:[#allocation5 + $0xe8] ss:$16 sps:$4 sm:$0xff]   ;;  %v2277_v46 = vld [vmem:[#allocation5 + $0x10c] ss:$16 sps:$4 sm:$0xff]   ;;  %v2246_v47 = vld [vmem:[#allocation5 + $0x1a0] ss:$16 sps:$4 sm:$0xff]  }
  0x5a   :  { %550 = vmatprep.subr.bf16.mxu1 %v2265_v30  ;;  %v2247_v48 = vld [vmem:[#allocation5 + $0x1c4] ss:$16 sps:$4 sm:$0xff]   ;;  %v2279_v49 = vld [vmem:[#allocation5 + $0x108] ss:$16 sps:$4 sm:$0xff]   ;;  %v2280_v50 = vld [vmem:[#allocation5 + $0x12c] ss:$16 sps:$4 sm:$0xff]  }
  0x5b   :  { %v2249_v51 = vld [vmem:[#allocation5 + $0x1c0] ss:$16 sps:$4 sm:$0xff]   ;;  %v2250_v52 = vld [vmem:[#allocation5 + $0x1e4] ss:$16 sps:$4 sm:$0xff]   ;;  %v2282_v53 = vld [vmem:[#allocation5 + $0x128] ss:$16 sps:$4 sm:$0xff]  }
  0x5c   :  { %510 = vmatpush1.bf16.msra.mxu0 %v2219_v9  ;;  %v2283_v54 = vld [vmem:[#allocation5 + $0x14c] ss:$16 sps:$4 sm:$0xff]   ;;  %v2254_v55 = vld [vmem:[#allocation5 + $0x1e0] ss:$16 sps:$4 sm:$0xff]   ;;  %v2303_v56 = vld [vmem:[#allocation7 + $0x4] ss:$16 sps:$4 sm:$0xff]  }
  0x5d   :  { %511 = vmatprep.subr.bf16.mxu0 %v2220_v10  ;;  %551 = vmatpush1.bf16.msra.mxu1 %v2267_v33  ;;  %v2285_v57 = vld [vmem:[#allocation5 + $0x148] ss:$16 sps:$4 sm:$0xff]   ;;  %v2286_v59 = vld [vmem:[#allocation5 + $0x16c] ss:$16 sps:$4 sm:$0xff]   ;;  %v2301_v60 = vld [vmem:[#allocation7] ss:$16 sps:$4 sm:$0xff]  }
  0x5e   :  { %552 = vmatprep.subr.bf16.mxu1 %v2268_v34  ;;  %v2309_v61 = vld [vmem:[#allocation7 + $0x24] ss:$16 sps:$4 sm:$0xff]   ;;  %v2288_v62 = vld [vmem:[#allocation5 + $0x168] ss:$16 sps:$4 sm:$0xff]   ;;  %v2289_v63 = vld [vmem:[#allocation5 + $0x18c] ss:$16 sps:$4 sm:$0xff]  }
  0x5f   :  { %v2307_v0 = vld [vmem:[#allocation7 + $0x20] ss:$16 sps:$4 sm:$0xff]   ;;  %v2315_v1 = vld [vmem:[#allocation7 + $0x44] ss:$16 sps:$4 sm:$0xff]   ;;  %v2291_v2 = vld [vmem:[#allocation5 + $0x188] ss:$16 sps:$4 sm:$0xff]  }
  0x60   :  { %512 = vmatpush1.bf16.msra.mxu0 %v2222_v11  ;;  %v2292_v3 = vld [vmem:[#allocation5 + $0x1ac] ss:$16 sps:$4 sm:$0xff]   ;;  %v2313_v4 = vld [vmem:[#allocation7 + $0x40] ss:$16 sps:$4 sm:$0xff]   ;;  %v2321_v5 = vld [vmem:[#allocation7 + $0x64] ss:$16 sps:$4 sm:$0xff]  }
  0x61   :  { %513 = vmatprep.subr.bf16.mxu0 %v2223_v12  ;;  %553 = vmatpush1.bf16.msra.mxu1 %v2270_v37  ;;  %v2294_v6 = vld [vmem:[#allocation5 + $0x1a8] ss:$16 sps:$4 sm:$0xff]   ;;  %v2295_v7 = vld [vmem:[#allocation5 + $0x1cc] ss:$16 sps:$4 sm:$0xff]   ;;  %v2319_v8 = vld [vmem:[#allocation7 + $0x60] ss:$16 sps:$4 sm:$0xff]  }
  0x62   :  { %554 = vmatprep.subr.bf16.mxu1 %v2271_v38  ;;  %v2327_v9 = vld [vmem:[#allocation7 + $0x84] ss:$16 sps:$4 sm:$0xff]   ;;  %v2297_v10 = vld [vmem:[#allocation5 + $0x1c8] ss:$16 sps:$4 sm:$0xff]   ;;  %v2298_v11 = vld [vmem:[#allocation5 + $0x1ec] ss:$16 sps:$4 sm:$0xff]  }
  0x63   :  { %v2300_v12 = vld [vmem:[#allocation5 + $0x1e8] ss:$16 sps:$4 sm:$0xff]   ;;  %v2325_v13 = vld [vmem:[#allocation7 + $0x80] ss:$16 sps:$4 sm:$0xff]   ;;  %v2333_v15 = vld [vmem:[#allocation7 + $0xa4] ss:$16 sps:$4 sm:$0xff]  }
  0x64   :  { %514 = vmatpush1.bf16.msra.mxu0 %v2225_v14  ;;  %v2306_v14 = vld [vmem:[#allocation7 + $0xc] ss:$16 sps:$4 sm:$0xff]   ;;  %v2331_v16 = vld [vmem:[#allocation7 + $0xa0] ss:$16 sps:$4 sm:$0xff]   ;;  %v2304_v18 = vld [vmem:[#allocation7 + $0x8] ss:$16 sps:$4 sm:$0xff]  }
  0x65   :  { %515 = vmatprep.subr.bf16.mxu0 %v2226_v17  ;;  %555 = vmatpush1.bf16.msra.mxu1 %v2273_v41  ;;  %v2339_v17 = vld [vmem:[#allocation7 + $0xc4] ss:$16 sps:$4 sm:$0xff]   ;;  %v2312_v19 = vld [vmem:[#allocation7 + $0x2c] ss:$16 sps:$4 sm:$0xff]   ;;  %v2337_v20 = vld [vmem:[#allocation7 + $0xc0] ss:$16 sps:$4 sm:$0xff]  }
  0x66   :  { %556 = vmatprep.subr.bf16.mxu1 %v2274_v42  ;;  %v2345_v21 = vld [vmem:[#allocation7 + $0xe4] ss:$16 sps:$4 sm:$0xff]   ;;  %v2310_v22 = vld [vmem:[#allocation7 + $0x28] ss:$16 sps:$4 sm:$0xff]   ;;  %s2651_s29 = smov [#allocation10]  }
  0x67   :  { %v2351_v25 = vld [vmem:[#allocation7 + $0x104] ss:$16 sps:$4 sm:$0xff]   ;;  %v2316_v26 = vld [vmem:[#allocation7 + $0x48] ss:$16 sps:$4 sm:$0xff]   ;;  %s1903_s30 = sshll.u32 %s2651_s29, 4  ;;  %s1904_s30 = int_to_ptr.vmem [resolvable:$true] %s1903_s30 }
  0x68   :  { %516 = vmatpush1.bf16.msra.mxu0 %v2228_v23  ;;  %v2318_v23 = vld [vmem:[#allocation7 + $0x4c] ss:$16 sps:$4 sm:$0xff]   ;;  %v2357_v29 = vld [vmem:[#allocation7 + $0x124] ss:$16 sps:$4 sm:$0xff]   ;;  %v2322_v30 = vld [vmem:[#allocation7 + $0x68] ss:$16 sps:$4 sm:$0xff]   ;;  %p2618_p5 = scmp.lt.s32.totalorder %s1904_s30, %s1904_s30 }
  0x69   :  { %517 = vmatprep.subr.bf16.mxu0 %v2229_v24  ;;  %557 = vmatpush1.bf16.msra.mxu1 %v2276_v45  ;;  %v2343_v24 = vld [vmem:[#allocation7 + $0xe0] ss:$16 sps:$4 sm:$0xff]   ;;  %v2363_v33 = vld [vmem:[#allocation7 + $0x144] ss:$16 sps:$4 sm:$0xff]   ;;  %v2328_v34 = vld [vmem:[#allocation7 + $0x88] ss:$16 sps:$4 sm:$0xff]  }
  0x6a   :  { %558 = vmatprep.subr.bf16.mxu1 %v2277_v46  ;;  %v2369_v37 = vld [vmem:[#allocation7 + $0x164] ss:$16 sps:$4 sm:$0xff]   ;;  %v2334_v38 = vld [vmem:[#allocation7 + $0xa8] ss:$16 sps:$4 sm:$0xff]   ;;  %s2613_s8 = scalar_lea.vmem %s1904_s30, 32 }
  0x6b   :  { %v2375_v41 = vld [vmem:[#allocation7 + $0x184] ss:$16 sps:$4 sm:$0xff]   ;;  %v2340_v42 = vld [vmem:[#allocation7 + $0xc8] ss:$16 sps:$4 sm:$0xff]   ;;  %p2614_p4 = scmp.ne.s32.totalorder %s1904_s30, %s2613_s8  ;;  %p2619_p6 = scmp.lt.s32.totalorder %s2613_s8, %s2613_s8 }
  0x6c   :  { %518 = vmatpush1.bf16.msra.mxu0 %v2231_v27  ;;  %v2324_v27 = vld [vmem:[#allocation7 + $0x6c] ss:$16 sps:$4 sm:$0xff]   ;;  %v2381_v45 = vld [vmem:[#allocation7 + $0x1a4] ss:$16 sps:$4 sm:$0xff]   ;;  %v2346_v46 = vld [vmem:[#allocation7 + $0xe8] ss:$16 sps:$4 sm:$0xff]  }
  0x6d   :  { %519 = vmatprep.subr.bf16.mxu0 %v2232_v28  ;;  %559 = vmatpush1.bf16.msra.mxu1 %v2279_v49  ;;  %v2349_v28 = vld [vmem:[#allocation7 + $0x100] ss:$16 sps:$4 sm:$0xff]   ;;  %v2352_v49 = vld [vmem:[#allocation7 + $0x108] ss:$16 sps:$4 sm:$0xff]   ;;  %p2620_p7 = por %p2619_p6, %p2618_p5 }
  0x6e   :  { %560 = vmatprep.subr.bf16.mxu1 %v2280_v50  ;;  %v2360_v50 = vld [vmem:[#allocation7 + $0x12c] ss:$16 sps:$4 sm:$0xff]  }
  0x6f   :  { %p2621_p8 = pnand %p2620_p7, %p2614_p4 }
  0x70   :  { %520 = vmatpush1.bf16.msra.mxu0 %v2234_v31  ;;  %v2330_v31 = vld [vmem:[#allocation7 + $0x8c] ss:$16 sps:$4 sm:$0xff]  }
  0x71   :  { %521 = vmatprep.subr.bf16.mxu0 %v2235_v32  ;;  %561 = vmatpush1.bf16.msra.mxu1 %v2282_v53  ;;  %v2355_v32 = vld [vmem:[#allocation7 + $0x120] ss:$16 sps:$4 sm:$0xff]   ;;  %v2364_v53 = vld [vmem:[#allocation7 + $0x148] ss:$16 sps:$4 sm:$0xff]  }
  0x72   :  { %562 = vmatprep.subr.bf16.mxu1 %v2283_v54  ;;  %v2372_v54 = vld [vmem:[#allocation7 + $0x16c] ss:$16 sps:$4 sm:$0xff]  }
  0x74   :  { %522 = vmatpush1.bf16.msra.mxu0 %v2237_v35  ;;  %v2336_v35 = vld [vmem:[#allocation7 + $0xac] ss:$16 sps:$4 sm:$0xff]  }
  0x75   :  { %523 = vmatprep.subr.bf16.mxu0 %v2238_v36  ;;  %563 = vmatpush1.bf16.msra.mxu1 %v2285_v57  ;;  %v2361_v36 = vld [vmem:[#allocation7 + $0x140] ss:$16 sps:$4 sm:$0xff]   ;;  %v2376_v57 = vld [vmem:[#allocation7 + $0x188] ss:$16 sps:$4 sm:$0xff]  }
  0x76   :  { %564 = vmatprep.subr.bf16.mxu1 %v2286_v59  ;;  %v2382_v59 = vld [vmem:[#allocation7 + $0x1a8] ss:$16 sps:$4 sm:$0xff]  }
  0x78   :  { %524 = vmatpush1.bf16.msra.mxu0 %v2240_v39  ;;  %v2342_v39 = vld [vmem:[#allocation7 + $0xcc] ss:$16 sps:$4 sm:$0xff]  }
  0x79   :  { %525 = vmatprep.subr.bf16.mxu0 %v2241_v40  ;;  %565 = vmatpush1.bf16.msra.mxu1 %v2288_v62  ;;  %v2367_v40 = vld [vmem:[#allocation7 + $0x160] ss:$16 sps:$4 sm:$0xff]  }
  0x7a   :  { %566 = vmatprep.subr.bf16.mxu1 %v2289_v63  ;;  %v2385_v62 = vld [vmem:[#allocation7 + $0x1c0] ss:$16 sps:$4 sm:$0xff]   ;;  %v2388_v63 = vld [vmem:[#allocation7 + $0x1c8] ss:$16 sps:$4 sm:$0xff]  }
  0x7c   :  { %526 = vmatpush1.bf16.msra.mxu0 %v2243_v43  ;;  %v2348_v43 = vld [vmem:[#allocation7 + $0xec] ss:$16 sps:$4 sm:$0xff]  }
  0x7d   :  { %527 = vmatprep.subr.bf16.mxu0 %v2244_v44  ;;  %567 = vmatpush1.bf16.msra.mxu1 %v2291_v2  ;;  %v2373_v44 = vld [vmem:[#allocation7 + $0x180] ss:$16 sps:$4 sm:$0xff]  }
  0x7e   :  { %568 = vmatprep.subr.bf16.mxu1 %v2292_v3  ;;  %v2391_v2 = vld [vmem:[#allocation7 + $0x1e0] ss:$16 sps:$4 sm:$0xff]   ;;  %v2394_v3 = vld [vmem:[#allocation7 + $0x1e8] ss:$16 sps:$4 sm:$0xff]  }
  0x80   :  { %528 = vmatpush1.bf16.msra.mxu0 %v2246_v47  ;;  %v2354_v47 = vld [vmem:[#allocation7 + $0x10c] ss:$16 sps:$4 sm:$0xff]  }
  0x81   :  { %529 = vmatprep.subr.bf16.mxu0 %v2247_v48  ;;  %569 = vmatpush1.bf16.msra.mxu1 %v2294_v6  ;;  %v2379_v48 = vld [vmem:[#allocation7 + $0x1a0] ss:$16 sps:$4 sm:$0xff]   ;;  %v161_v6 = vlaneseq }
  0x82   :  { %570 = vmatprep.subr.bf16.mxu1 %v2295_v7 }
  0x83   :  { %v2752_v7 = vshrl.u32 %v161_v6, 7  ;;  %v2459_v6 = vld [vmem:[#allocation7 + $0x344] ss:$16 sps:$4 sm:$0xff]  }
  0x84   :  { %530 = vmatpush1.bf16.msra.mxu0 %v2249_v51  ;;  %v2358_v51 = vld [vmem:[#allocation7 + $0x128] ss:$16 sps:$4 sm:$0xff]  }
  0x85   :  { %531 = vmatprep.subr.bf16.mxu0 %v2250_v52  ;;  %571 = vmatpush1.bf16.msra.mxu1 %v2297_v10  ;;  %v2366_v52 = vld [vmem:[#allocation7 + $0x14c] ss:$16 sps:$4 sm:$0xff]   ;;  %v167_v10 = vsub.s32 1, %v2752_v7 }
  0x86   :  { %572 = vmatprep.subr.bf16.mxu1 %v2298_v11 }
  0x88   :  { %532 = vmatpush1.bf16.msra.mxu0 %v2254_v55  ;;  %v2370_v55 = vld [vmem:[#allocation7 + $0x168] ss:$16 sps:$4 sm:$0xff]  }
  0x89   :  { %1381 = vmatprep.subr.bf16.mxu0 %v2303_v56  ;;  %573 = vmatpush1.bf16.msra.mxu1 %v2300_v12  ;;  %v2378_v56 = vld [vmem:[#allocation7 + $0x18c] ss:$16 sps:$4 sm:$0xff]  }
  0x8a   :  { %1463 = vmatprep.subr.bf16.mxu1 %v2306_v14 }
  0x8b   :  { %534 = vmatmul.mubr.bf16.vlgmr.msra.gmra.mrb[0].mxu0 %v93_v58 }
  0x8c   :  { %1382 = vmatpush1.bf16.msra.mxu0 %v2301_v60  ;;  %575 = vmatmul.mubr.bf16.vlgmr.msra.gmra.mrb[0].mxu1 %v93_v58  ;;  %v2384_v58 = vld [vmem:[#allocation7 + $0x1ac] ss:$16 sps:$4 sm:$0xff]   ;;  %v2387_v60 = vld [vmem:[#allocation7 + $0x1c4] ss:$16 sps:$4 sm:$0xff]  }
  0x8d   :  { %1383 = vmatprep.subr.bf16.mxu0 %v2309_v61  ;;  %1464 = vmatpush1.bf16.msra.mxu1 %v2304_v18  ;;  %v2390_v61 = vld [vmem:[#allocation7 + $0x1cc] ss:$16 sps:$4 sm:$0xff]  }
  0x8e   :  { %1465 = vmatprep.subr.bf16.mxu1 %v2312_v19 }
  0x90   :  { %1384 = vmatpush1.bf16.msra.mxu0 %v2307_v0  ;;  %v2393_v0 = vld [vmem:[#allocation7 + $0x1e4] ss:$16 sps:$4 sm:$0xff]  }
  0x91   :  { %1385 = vmatprep.subr.bf16.mxu0 %v2315_v1  ;;  %1466 = vmatpush1.bf16.msra.mxu1 %v2310_v22  ;;  %v2396_v1 = vld [vmem:[#allocation7 + $0x1ec] ss:$16 sps:$4 sm:$0xff]   ;;  %v2397_v22 = vld [vmem:[#allocation7 + $0x200] ss:$16 sps:$4 sm:$0xff]  }
  0x92   :  { %1467 = vmatprep.subr.bf16.mxu1 %v2318_v23  ;;  %v2400_v23 = vld [vmem:[#allocation7 + $0x208] ss:$16 sps:$4 sm:$0xff]  }
  0x94   :  { %1386 = vmatpush1.bf16.msra.mxu0 %v2313_v4  ;;  %v2399_v4 = vld [vmem:[#allocation7 + $0x204] ss:$16 sps:$4 sm:$0xff]  }
  0x95   :  { %1387 = vmatprep.subr.bf16.mxu0 %v2321_v5  ;;  %1468 = vmatpush1.bf16.msra.mxu1 %v2316_v26  ;;  %v2402_v5 = vld [vmem:[#allocation7 + $0x20c] ss:$16 sps:$4 sm:$0xff]  }
  0x96   :  { %1469 = vmatprep.subr.bf16.mxu1 %v2324_v27  ;;  %v2408_v26 = vld [vmem:[#allocation7 + $0x22c] ss:$16 sps:$4 sm:$0xff]   ;;  %v2403_v27 = vld [vmem:[#allocation7 + $0x220] ss:$16 sps:$4 sm:$0xff]  }
  0x98   :  { %1388 = vmatpush1.bf16.msra.mxu0 %v2319_v8  ;;  %v163_v8 = vsub.s32 0, %v2752_v7 }
  0x99   :  { %1389 = vmatprep.subr.bf16.mxu0 %v2327_v9  ;;  %1470 = vmatpush1.bf16.msra.mxu1 %v2322_v30  ;;  %v2758_v9 = vld [vmem:[%s2806_s2] sm:$0xf] }
  0x9a   :  { %1471 = vmatprep.subr.bf16.mxu1 %v2330_v31  ;;  %v164_v11 = vrot.slane %v2758_v9, %v163_v8  ;;  %v168_v12 = vrot.slane %v2758_v9, %v167_v10  ;;  %v2414_v30 = vld [vmem:[#allocation7 + $0x24c] ss:$16 sps:$4 sm:$0xff]   ;;  %v2409_v31 = vld [vmem:[#allocation7 + $0x240] ss:$16 sps:$4 sm:$0xff]  }
  0x9c   :  { %1390 = vmatpush1.bf16.msra.mxu0 %v2325_v13 }
  0x9d   :  { %1391 = vmatprep.subr.bf16.mxu0 %v2333_v15  ;;  %1472 = vmatpush1.bf16.msra.mxu1 %v2328_v34  ;;  %v2420_v34 = vld [vmem:[#allocation7 + $0x26c] ss:$16 sps:$4 sm:$0xff]  }
  0x9e   :  { %1473 = vmatprep.subr.bf16.mxu1 %v2336_v35  ;;  %v175_v35 = vsub.s32 3, %v2752_v7 }
  0xa0   :  { %1392 = vmatpush1.bf16.msra.mxu0 %v2331_v16 }
  0xa1   :  { %1393 = vmatprep.subr.bf16.mxu0 %v2339_v17  ;;  %1474 = vmatpush1.bf16.msra.mxu1 %v2334_v38  ;;  %v2423_v38 = vld [vmem:[#allocation7 + $0x284] ss:$16 sps:$4 sm:$0xff]  }
  0xa2   :  { %1475 = vmatprep.subr.bf16.mxu1 %v2342_v39  ;;  %v2426_v39 = vld [vmem:[#allocation7 + $0x28c] ss:$16 sps:$4 sm:$0xff]  }
  0xa4   :  { %1394 = vmatpush1.bf16.msra.mxu0 %v2337_v20 }
  0xa5   :  { %1395 = vmatprep.subr.bf16.mxu0 %v2345_v21  ;;  %1476 = vmatpush1.bf16.msra.mxu1 %v2340_v42  ;;  %v2424_v42 = vld [vmem:[#allocation7 + $0x288] ss:$16 sps:$4 sm:$0xff]  }
  0xa6   :  { %1477 = vmatprep.subr.bf16.mxu1 %v2348_v43 }
  0xa8   :  { %1396 = vmatpush1.bf16.msra.mxu0 %v2343_v24 }
  0xa9   :  { %1397 = vmatprep.subr.bf16.mxu0 %v2351_v25  ;;  %1478 = vmatpush1.bf16.msra.mxu1 %v2346_v46  ;;  %v2405_v25 = vld [vmem:[#allocation7 + $0x224] ss:$16 sps:$4 sm:$0xff]  }
  0xaa   :  { %1479 = vmatprep.subr.bf16.mxu1 %v2354_v47 }
  0xac   :  { %1398 = vmatpush1.bf16.msra.mxu0 %v2349_v28  ;;  %v2406_v28 = vld [vmem:[#allocation7 + $0x228] ss:$16 sps:$4 sm:$0xff]  }
  0xad   :  { %1399 = vmatprep.subr.bf16.mxu0 %v2357_v29  ;;  %1480 = vmatpush1.bf16.msra.mxu1 %v2352_v49  ;;  %v2411_v29 = vld [vmem:[#allocation7 + $0x244] ss:$16 sps:$4 sm:$0xff]  }
  0xae   :  { %1481 = vmatprep.subr.bf16.mxu1 %v2360_v50  ;;  %v2427_v50 = vld [vmem:[#allocation7 + $0x2a0] ss:$16 sps:$4 sm:$0xff]  }
  0xb0   :  { %1400 = vmatpush1.bf16.msra.mxu0 %v2355_v32  ;;  %v2412_v32 = vld [vmem:[#allocation7 + $0x248] ss:$16 sps:$4 sm:$0xff]  }
  0xb1   :  { %1401 = vmatprep.subr.bf16.mxu0 %v2363_v33  ;;  %1482 = vmatpush1.bf16.msra.mxu1 %v2358_v51  ;;  %v2417_v33 = vld [vmem:[#allocation7 + $0x264] ss:$16 sps:$4 sm:$0xff]   ;;  %v2430_v51 = vld [vmem:[#allocation7 + $0x2a8] ss:$16 sps:$4 sm:$0xff]  }
  0xb2   :  { %1483 = vmatprep.subr.bf16.mxu1 %v2366_v52 }
  0xb4   :  { %1402 = vmatpush1.bf16.msra.mxu0 %v2361_v36  ;;  %v2415_v36 = vld [vmem:[#allocation7 + $0x260] ss:$16 sps:$4 sm:$0xff]  }
  0xb5   :  { %1403 = vmatprep.subr.bf16.mxu0 %v2369_v37  ;;  %1484 = vmatpush1.bf16.msra.mxu1 %v2364_v53  ;;  %v2418_v37 = vld [vmem:[#allocation7 + $0x268] ss:$16 sps:$4 sm:$0xff]   ;;  %v2435_v53 = vld [vmem:[#allocation7 + $0x2c4] ss:$16 sps:$4 sm:$0xff]  }
  0xb6   :  { %1485 = vmatprep.subr.bf16.mxu1 %v2372_v54  ;;  %v2438_v54 = vld [vmem:[#allocation7 + $0x2cc] ss:$16 sps:$4 sm:$0xff]  }
  0xb8   :  { %1404 = vmatpush1.bf16.msra.mxu0 %v2367_v40  ;;  %v176_v40 = vrot.slane %v2758_v9, %v175_v35 }
  0xb9   :  { %1405 = vmatprep.subr.bf16.mxu0 %v2375_v41  ;;  %1486 = vmatpush1.bf16.msra.mxu1 %v2370_v55  ;;  %v2421_v41 = vld [vmem:[#allocation7 + $0x280] ss:$16 sps:$4 sm:$0xff]  }
  0xba   :  { %1487 = vmatprep.subr.bf16.mxu1 %v2378_v56  ;;  %v2433_v56 = vld [vmem:[#allocation7 + $0x2c0] ss:$16 sps:$4 sm:$0xff]  }
  0xbc   :  { %1406 = vmatpush1.bf16.msra.mxu0 %v2373_v44  ;;  %v2429_v44 = vld [vmem:[#allocation7 + $0x2a4] ss:$16 sps:$4 sm:$0xff]  }
  0xbd   :  { %1407 = vmatprep.subr.bf16.mxu0 %v2381_v45  ;;  %1488 = vmatpush1.bf16.msra.mxu1 %v2376_v57  ;;  %v2432_v45 = vld [vmem:[#allocation7 + $0x2ac] ss:$16 sps:$4 sm:$0xff]   ;;  %v2436_v57 = vld [vmem:[#allocation7 + $0x2c8] ss:$16 sps:$4 sm:$0xff]  }
  0xbe   :  { %1489 = vmatprep.subr.bf16.mxu1 %v2384_v58  ;;  %v2441_v58 = vld [vmem:[#allocation7 + $0x2e4] ss:$16 sps:$4 sm:$0xff]  }
  0xc0   :  { %1408 = vmatpush1.bf16.msra.mxu0 %v2379_v48 }
  0xc1   :  { %1490 = vmatpush1.bf16.msra.mxu1 %v2382_v59  ;;  %1409 = vmatprep.subr.bf16.mxu0 %v2387_v60  ;;  %v2444_v59 = vld [vmem:[#allocation7 + $0x2ec] ss:$16 sps:$4 sm:$0xff]   ;;  %v2439_v60 = vld [vmem:[#allocation7 + $0x2e0] ss:$16 sps:$4 sm:$0xff]  }
  0xc2   :  { %1491 = vmatprep.subr.bf16.mxu1 %v2390_v61  ;;  %v2442_v61 = vld [vmem:[#allocation7 + $0x2e8] ss:$16 sps:$4 sm:$0xff]  }
  0xc4   :  { %1410 = vmatpush1.bf16.msra.mxu0 %v2385_v62  ;;  %v2447_v62 = vld [vmem:[#allocation7 + $0x304] ss:$16 sps:$4 sm:$0xff]  }
  0xc5   :  { %1492 = vmatpush1.bf16.msra.mxu1 %v2388_v63  ;;  %1411 = vmatprep.subr.bf16.mxu0 %v2393_v0  ;;  %v2450_v63 = vld [vmem:[#allocation7 + $0x30c] ss:$16 sps:$4 sm:$0xff]   ;;  %v2445_v0 = vld [vmem:[#allocation7 + $0x300] ss:$16 sps:$4 sm:$0xff]  }
  0xc6   :  { %1493 = vmatprep.subr.bf16.mxu1 %v2396_v1  ;;  %v2448_v1 = vld [vmem:[#allocation7 + $0x308] ss:$16 sps:$4 sm:$0xff]  }
  0xc8   :  { %1412 = vmatpush1.bf16.msra.mxu0 %v2391_v2  ;;  %v2453_v2 = vld [vmem:[#allocation7 + $0x324] ss:$16 sps:$4 sm:$0xff]  }
  0xc9   :  { %1494 = vmatpush1.bf16.msra.mxu1 %v2394_v3  ;;  %1422 = vmatprep.subr.bf16.mxu0 %v2399_v4  ;;  %v2456_v3 = vld [vmem:[#allocation7 + $0x32c] ss:$16 sps:$4 sm:$0xff]   ;;  %v2451_v4 = vld [vmem:[#allocation7 + $0x320] ss:$16 sps:$4 sm:$0xff]  }
  0xca   :  { %1504 = vmatprep.subr.bf16.mxu1 %v2402_v5  ;;  %v2454_v5 = vld [vmem:[#allocation7 + $0x328] ss:$16 sps:$4 sm:$0xff]  }
 0x15e   :  { %v535_v13 = vpop.f32.mrb[0].mxu0 }
 0x15f   :  { %v536_v14 = vadd.f32 %v535_v13, %v164_v11  ;;  %v537_v15 = vpop.f32.mrb[1].mxu0  ;;  %v2771_v43 = vpop.f32.mrb[0].mxu1  ;;  %v2462_v11 = vld [vmem:[#allocation7 + $0x34c] ss:$16 sps:$4 sm:$0xff]   ;;  %v2460_v13 = vld [vmem:[#allocation7 + $0x348] ss:$16 sps:$4 sm:$0xff]  }
 0x160   :  { %v538_v16 = vadd.f32 %v537_v15, %v168_v12  ;;  %v539_v17 = vpop.f32.mrb[2].mxu0  ;;  %v578_v46 = vpop.f32.mrb[1].mxu1  ;;  %v2457_v12 = vld [vmem:[#allocation7 + $0x340] ss:$16 sps:$4 sm:$0xff]   ;;  %v2468_v15 = vld [vmem:[#allocation7 + $0x36c] ss:$16 sps:$4 sm:$0xff]  }
 0x161   :  { %v583_v18 = vmax.f32 %v536_v14, 0.0  ;;  %v540_v19 = vpop.f32.mrb[3].mxu0  ;;  %v579_v47 = vadd.f32 %v578_v46, %v176_v40  ;;  %v580_v48 = vpop.f32.mrb[2].mxu1  ;;  %v2465_v14 = vld [vmem:[#allocation7 + $0x364] ss:$16 sps:$4 sm:$0xff]   ;;  %v2500_v46 = vld [vmem:[#allocation8 + $0x88] sm:$0xff]  }
 0x162   :  { %v584_v20 = vmax.f32 %v538_v16, 0.0  ;;  %v581_v49 = vpop.f32.mrb[3].mxu1  ;;  %v2463_v16 = vld [vmem:[#allocation7 + $0x360] ss:$16 sps:$4 sm:$0xff]   ;;  %v2466_v17 = vld [vmem:[#allocation7 + $0x368] ss:$16 sps:$4 sm:$0xff]  }
 0x163   :  { %v587_v24 = vpack.c.bf16 %v583_v18, %v583_v18  ;;  %v586_v52 = vmax.f32 %v579_v47, 0.0  ;;  %v2471_v18 = vld [vmem:[#allocation7 + $0x384] ss:$16 sps:$4 sm:$0xff]   ;;  %v2474_v19 = vld [vmem:[#allocation7 + $0x38c] ss:$16 sps:$4 sm:$0xff]  }
 0x164   :  { %v588_v21 = vpack.c.bf16 %v584_v20, %v584_v20  ;;  %v2469_v20 = vld [vmem:[#allocation7 + $0x380] ss:$16 sps:$4 sm:$0xff]  }
 0x165   :  { %v590_v55 = vpack.c.bf16 %v586_v52, %v586_v52  ;;  %v2495_v40 = vld [vmem:[#allocation8] sm:$0xff]   ;;  %v2501_v47 = vld [vmem:[#allocation8 + $0x50] sm:$0xff]   ;;  %v2506_v52 = vld [vmem:[#allocation8 + $0xd8] sm:$0xff]  }
 0x166   :  { %1413 = vmatprep.mubr.bf16.mxu0 %v588_v21  ;;  %1495 = vmatprep.mubr.bf16.mxu1 %v588_v21  ;;  %v2472_v21 = vld [vmem:[#allocation7 + $0x388] ss:$16 sps:$4 sm:$0xff]   ;;  %v2502_v48 = vld [vmem:[#allocation8 + $0xd0] sm:$0xff]  }
 0x167   :  { %1414 = vmatmul.mubr.bf16.vlgmr.msra.gmra.mrb[4].mxu0 %v587_v24  ;;  %1496 = vmatmul.mubr.bf16.vlgmr.msra.gmra.mrb[4].mxu1 %v587_v24  ;;  %v2480_v24 = vld [vmem:[#allocation7 + $0x3ac] ss:$16 sps:$4 sm:$0xff]   ;;  %v2503_v49 = vld [vmem:[#allocation8 + $0x10] sm:$0xff]  }
 0x168   :  { %1423 = vmatpush1.bf16.msra.mxu0 %v2397_v22  ;;  %1505 = vmatpush1.bf16.msra.mxu1 %v2400_v23  ;;  %v171_v22 = vsub.s32 2, %v2752_v7  ;;  %v2477_v23 = vld [vmem:[#allocation7 + $0x3a4] ss:$16 sps:$4 sm:$0xff]  }
 0x169   :  { %1424 = vmatprep.subr.bf16.mxu0 %v2405_v25  ;;  %1506 = vmatprep.subr.bf16.mxu1 %v2408_v26  ;;  %v2475_v25 = vld [vmem:[#allocation7 + $0x3a0] ss:$16 sps:$4 sm:$0xff]   ;;  %v2478_v26 = vld [vmem:[#allocation7 + $0x3a8] ss:$16 sps:$4 sm:$0xff]  }
 0x16a   :  { %1454 = vmatprep.mubr.bf16.mxu0 %v590_v55  ;;  %1536 = vmatprep.mubr.bf16.mxu1 %v590_v55  ;;  %v2509_v55 = vld [vmem:[#allocation8 + $0x60] sm:$0xff]  }
 0x16c   :  { %1425 = vmatpush1.bf16.msra.mxu0 %v2403_v27  ;;  %1507 = vmatpush1.bf16.msra.mxu1 %v2406_v28  ;;  %v172_v27 = vrot.slane %v2758_v9, %v171_v22  ;;  %v2483_v28 = vld [vmem:[#allocation7 + $0x3c4] ss:$16 sps:$4 sm:$0xff]  }
 0x16d   :  { %1426 = vmatprep.subr.bf16.mxu0 %v2411_v29  ;;  %1508 = vmatprep.subr.bf16.mxu1 %v2414_v30  ;;  %v2486_v29 = vld [vmem:[#allocation7 + $0x3cc] ss:$16 sps:$4 sm:$0xff]   ;;  %v2481_v30 = vld [vmem:[#allocation7 + $0x3c0] ss:$16 sps:$4 sm:$0xff]  }
 0x16e   :  { %v2493_v9 = vld [vmem:[#allocation8 + $0x40] sm:$0xff]  }
 0x170   :  { %1427 = vmatpush1.bf16.msra.mxu0 %v2409_v31  ;;  %1509 = vmatpush1.bf16.msra.mxu1 %v2412_v32  ;;  %v2484_v31 = vld [vmem:[#allocation7 + $0x3c8] ss:$16 sps:$4 sm:$0xff]   ;;  %v577_v32 = vadd.f32 %v2771_v43, %v172_v27 }
 0x171   :  { %1428 = vmatprep.subr.bf16.mxu0 %v2417_v33  ;;  %1510 = vmatprep.subr.bf16.mxu1 %v2420_v34  ;;  %v2489_v33 = vld [vmem:[#allocation7 + $0x3e4] ss:$16 sps:$4 sm:$0xff]   ;;  %v2492_v34 = vld [vmem:[#allocation7 + $0x3ec] ss:$16 sps:$4 sm:$0xff]  }
 0x172   :  { %v2497_v43 = vld [vmem:[#allocation8 + $0x48] sm:$0xff]  }
 0x174   :  { %1429 = vmatpush1.bf16.msra.mxu0 %v2415_v36  ;;  %1511 = vmatpush1.bf16.msra.mxu1 %v2418_v37  ;;  %v2487_v36 = vld [vmem:[#allocation7 + $0x3e0] ss:$16 sps:$4 sm:$0xff]   ;;  %v2490_v37 = vld [vmem:[#allocation7 + $0x3e8] ss:$16 sps:$4 sm:$0xff]  }
 0x175   :  { %1430 = vmatprep.subr.bf16.mxu0 %v2423_v38  ;;  %1512 = vmatprep.subr.bf16.mxu1 %v2426_v39  ;;  %v585_v38 = vmax.f32 %v577_v32, 0.0  ;;  %v2494_v39 = vld [vmem:[#allocation8 + $0xc0] sm:$0xff]  }
 0x178   :  { %1431 = vmatpush1.bf16.msra.mxu0 %v2421_v41  ;;  %1513 = vmatpush1.bf16.msra.mxu1 %v2424_v42  ;;  %v2496_v41 = vld [vmem:[#allocation8 + $0x80] sm:$0xff]   ;;  %v589_v42 = vpack.c.bf16 %v585_v38, %v585_v38 }
 0x179   :  { %1432 = vmatprep.subr.bf16.mxu0 %v2429_v44  ;;  %1514 = vmatprep.subr.bf16.mxu1 %v2432_v45  ;;  %v2498_v44 = vld [vmem:[#allocation8 + $0xc8] sm:$0xff]  }
 0x17a   :  { %v2499_v45 = vld [vmem:[#allocation8 + $0x8] sm:$0xff]  }
 0x17c   :  { %1433 = vmatpush1.bf16.msra.mxu0 %v2427_v50  ;;  %1515 = vmatpush1.bf16.msra.mxu1 %v2430_v51  ;;  %v2504_v50 = vld [vmem:[#allocation8 + $0x90] sm:$0xff]   ;;  %v2505_v51 = vld [vmem:[#allocation8 + $0x58] sm:$0xff]  }
 0x17d   :  { %1434 = vmatprep.subr.bf16.mxu0 %v2435_v53  ;;  %1516 = vmatprep.subr.bf16.mxu1 %v2438_v54  ;;  %v2507_v53 = vld [vmem:[#allocation8 + $0x18] sm:$0xff]  }
 0x17e   :  { %v2508_v54 = vld [vmem:[#allocation8 + $0x98] sm:$0xff]  }
 0x180   :  { %1435 = vmatpush1.bf16.msra.mxu0 %v2433_v56  ;;  %1517 = vmatpush1.bf16.msra.mxu1 %v2436_v57  ;;  %v2510_v56 = vld [vmem:[#allocation8 + $0xe0] sm:$0xff]  }
 0x181   :  { %1436 = vmatprep.subr.bf16.mxu0 %v2441_v58  ;;  %1518 = vmatprep.subr.bf16.mxu1 %v2444_v59  ;;  %v2511_v57 = vld [vmem:[#allocation8 + $0x20] sm:$0xff]   ;;  %v2513_v59 = vld [vmem:[#allocation8 + $0x68] sm:$0xff]  }
 0x182   :  { %v2512_v58 = vld [vmem:[#allocation8 + $0xa0] sm:$0xff]  }
 0x184   :  { %1437 = vmatpush1.bf16.msra.mxu0 %v2439_v60  ;;  %1519 = vmatpush1.bf16.msra.mxu1 %v2442_v61  ;;  %v2514_v60 = vld [vmem:[#allocation8 + $0xe8] sm:$0xff]  }
 0x185   :  { %1438 = vmatprep.subr.bf16.mxu0 %v2447_v62  ;;  %1520 = vmatprep.subr.bf16.mxu1 %v2450_v63  ;;  %v2515_v61 = vld [vmem:[#allocation8 + $0x28] sm:$0xff]   ;;  %v2517_v63 = vld [vmem:[#allocation8 + $0x70] sm:$0xff]  }
 0x186   :  { %v2516_v62 = vld [vmem:[#allocation8 + $0xa8] sm:$0xff]  }
 0x188   :  { %1439 = vmatpush1.bf16.msra.mxu0 %v2445_v0  ;;  %1521 = vmatpush1.bf16.msra.mxu1 %v2448_v1  ;;  %v2518_v0 = vld [vmem:[#allocation8 + $0xf0] sm:$0xff]  }
 0x189   :  { %1440 = vmatprep.subr.bf16.mxu0 %v2453_v2  ;;  %1522 = vmatprep.subr.bf16.mxu1 %v2456_v3  ;;  %v2519_v1 = vld [vmem:[#allocation8 + $0x30] sm:$0xff]   ;;  %v2521_v3 = vld [vmem:[#allocation8 + $0x78] sm:$0xff]  }
 0x18a   :  { %v2520_v2 = vld [vmem:[#allocation8 + $0xb0] sm:$0xff]  }
 0x18c   :  { %1441 = vmatpush1.bf16.msra.mxu0 %v2451_v4  ;;  %1523 = vmatpush1.bf16.msra.mxu1 %v2454_v5  ;;  %v2522_v4 = vld [vmem:[#allocation8 + $0xf8] sm:$0xff]  }
 0x18d   :  { %1442 = vmatprep.subr.bf16.mxu0 %v2459_v6  ;;  %1524 = vmatprep.subr.bf16.mxu1 %v2462_v11  ;;  %v2523_v5 = vld [vmem:[#allocation8 + $0x38] sm:$0xff]  }
 0x18e   :  { %v2524_v6 = vld [vmem:[#allocation8 + $0xb8] sm:$0xff]  }
 0x18f   :  { %v719_v11 = vld [vmem:[%s2808_s4] sm:$0xf] }
 0x190   :  { %1443 = vmatpush1.bf16.msra.mxu0 %v2457_v12  ;;  %1525 = vmatpush1.bf16.msra.mxu1 %v2460_v13  ;;  %v724_v12 = vrot.slane %v719_v11, %v163_v8  ;;  %v732_v13 = vrot.slane %v719_v11, %v171_v22 }
 0x191   :  { %1444 = vmatprep.subr.bf16.mxu0 %v2465_v14  ;;  %1526 = vmatprep.subr.bf16.mxu1 %v2468_v15  ;;  %v728_v14 = vrot.slane %v719_v11, %v167_v10  ;;  %v736_v15 = vrot.slane %v719_v11, %v175_v35 }
 0x194   :  { %1445 = vmatpush1.bf16.msra.mxu0 %v2463_v16  ;;  %1527 = vmatpush1.bf16.msra.mxu1 %v2466_v17 }
 0x195   :  { %1446 = vmatprep.subr.bf16.mxu0 %v2471_v18  ;;  %1528 = vmatprep.subr.bf16.mxu1 %v2474_v19 }
 0x198   :  { %1447 = vmatpush1.bf16.msra.mxu0 %v2469_v20  ;;  %1529 = vmatpush1.bf16.msra.mxu1 %v2472_v21 }
 0x199   :  { %1448 = vmatprep.subr.bf16.mxu0 %v2477_v23  ;;  %1530 = vmatprep.subr.bf16.mxu1 %v2480_v24 }
 0x19c   :  { %1449 = vmatpush1.bf16.msra.mxu0 %v2475_v25  ;;  %1531 = vmatpush1.bf16.msra.mxu1 %v2478_v26 }
 0x19d   :  { %1450 = vmatprep.subr.bf16.mxu0 %v2483_v28  ;;  %1532 = vmatprep.subr.bf16.mxu1 %v2486_v29 }
 0x1a0   :  { %1451 = vmatpush1.bf16.msra.mxu0 %v2481_v30  ;;  %1533 = vmatpush1.bf16.msra.mxu1 %v2484_v31 }
 0x1a1   :  { %1452 = vmatprep.subr.bf16.mxu0 %v2489_v33  ;;  %1534 = vmatprep.subr.bf16.mxu1 %v2492_v34  ;;  %v2107_v34 = vld [vmem:[%s2810_s6] ss:$0 sm:$0xff] }
 0x1a4   :  { %1453 = vmatpush1.bf16.msra.mxu0 %v2487_v36  ;;  %1535 = vmatpush1.bf16.msra.mxu1 %v2490_v37 }
 0x1a5   :  { %2140 = vmatprep.subr.bf16.mxu0 %v2493_v9  ;;  %2162 = vmatprep.subr.bf16.mxu1 %v2494_v39 }
 0x1a7   :  { %1455 = vmatmul.mubr.bf16.vlgmr.msra.gmra.mrb[4].mxu0 %v589_v42  ;;  %1537 = vmatmul.mubr.bf16.vlgmr.msra.gmra.mrb[4].mxu1 %v589_v42 }
 0x1a8   :  { %2141 = vmatpush3.bf16.msra.mxu0 %v2495_v40  ;;  %2163 = vmatpush3.bf16.msra.mxu1 %v2496_v41 }
 0x1a9   :  { %2142 = vmatprep.subr.bf16.mxu0 %v2497_v43  ;;  %2164 = vmatprep.subr.bf16.mxu1 %v2498_v44 }
 0x1ac   :  { %2143 = vmatpush3.bf16.msra.mxu0 %v2499_v45  ;;  %2165 = vmatpush3.bf16.msra.mxu1 %v2500_v46 }
 0x1ad   :  { %2144 = vmatprep.subr.bf16.mxu0 %v2501_v47  ;;  %2166 = vmatprep.subr.bf16.mxu1 %v2502_v48 }
 0x1b0   :  { %2145 = vmatpush3.bf16.msra.mxu0 %v2503_v49  ;;  %2167 = vmatpush3.bf16.msra.mxu1 %v2504_v50 }
 0x1b1   :  { %2146 = vmatprep.subr.bf16.mxu0 %v2505_v51  ;;  %2168 = vmatprep.subr.bf16.mxu1 %v2506_v52 }
 0x1b4   :  { %2147 = vmatpush3.bf16.msra.mxu0 %v2507_v53  ;;  %2169 = vmatpush3.bf16.msra.mxu1 %v2508_v54 }
 0x1b5   :  { %2148 = vmatprep.subr.bf16.mxu0 %v2509_v55  ;;  %2170 = vmatprep.subr.bf16.mxu1 %v2510_v56 }
 0x1b8   :  { %2149 = vmatpush3.bf16.msra.mxu0 %v2511_v57  ;;  %2171 = vmatpush3.bf16.msra.mxu1 %v2512_v58 }
 0x1b9   :  { %2150 = vmatprep.subr.bf16.mxu0 %v2513_v59  ;;  %2172 = vmatprep.subr.bf16.mxu1 %v2514_v60 }
 0x1bc   :  { %2151 = vmatpush3.bf16.msra.mxu0 %v2515_v61  ;;  %2173 = vmatpush3.bf16.msra.mxu1 %v2516_v62 }
 0x1bd   :  { %2152 = vmatprep.subr.bf16.mxu0 %v2517_v63  ;;  %2174 = vmatprep.subr.bf16.mxu1 %v2518_v0 }
 0x1c0   :  { %2153 = vmatpush3.bf16.msra.mxu0 %v2519_v1  ;;  %2175 = vmatpush3.bf16.msra.mxu1 %v2520_v2 }
 0x1c1   :  { %2154 = vmatprep.subr.bf16.mxu0 %v2521_v3  ;;  %2176 = vmatprep.subr.bf16.mxu1 %v2522_v4 }
 0x1c4   :  { %2155 = vmatpush3.bf16.msra.mxu0 %v2523_v5  ;;  %2177 = vmatpush3.bf16.msra.mxu1 %v2524_v6 }
 0x27a   :  { %v1456_v16 = vpop.f32.mrb[4].mxu0  ;;  %v1538_v17 = vpop.f32.mrb[4].mxu1 }
 0x27b   :  { %v2184_v18 = vadd.f32 %v1456_v16, %v724_v12  ;;  %v2186_v19 = vadd.f32 %v1538_v17, %v732_v13  ;;  %v1458_v20 = vpop.f32.mrb[5].mxu0  ;;  %v1540_v21 = vpop.f32.mrb[5].mxu1 }
 0x27c   :  { %v2185_v23 = vadd.f32 %v1458_v20, %v728_v14  ;;  %v2187_v24 = vadd.f32 %v1540_v21, %v736_v15  ;;  %v1460_v25 = vpop.f32.mrb[6].mxu0  ;;  %v1542_v26 = vpop.f32.mrb[6].mxu1 }
 0x27d   :  { %v1545_v8 = vmax.f32 %v2184_v18, 0.0  ;;  %v1547_v27 = vmax.f32 %v2186_v19, 0.0  ;;  %v1461_v28 = vpop.f32.mrb[7].mxu0  ;;  %v1543_v22 = vpop.f32.mrb[7].mxu1 }
 0x27e   :  { %v1546_v29 = vmax.f32 %v2185_v23, 0.0  ;;  %v1548_v30 = vmax.f32 %v2187_v24, 0.0 }
 0x27f   :  { %v1549_v7 = vpack.c.bf16 %v1545_v8, %v1545_v8  ;;  %v1551_v35 = vpack.c.bf16 %v1547_v27, %v1547_v27 }
 0x280   :  { %v1550_v10 = vpack.c.bf16 %v1546_v29, %v1546_v29  ;;  %v1552_v31 = vpack.c.bf16 %v1548_v30, %v1548_v30 }
 0x282   :  { %1848 = vmatprep.mubr.bf16.mxu0 %v1550_v10  ;;  %1888 = vmatprep.mubr.bf16.mxu1 %v1552_v31 }
 0x283   :  { %1849 = vmatmul.mubr.bf16.vlgmr.msra.gmra.mrb[8].mxu0 %v1549_v7  ;;  %1889 = vmatmul.mubr.bf16.vlgmr.msra.gmra.mrb[8].mxu1 %v1551_v35 }
 0x356   :  { %v2156_v32 = vpop.f32.mrb[8].mxu0  ;;  %v2178_v33 = vpop.f32.mrb[8].mxu1 }
 0x357   :  { %v2157_v36 = vpop.f32.mrb[9].mxu0  ;;  %v2179_v37 = vpop.f32.mrb[9].mxu1 }
 0x358   :  { %v2158_v38 = vadd.f32 %v2157_v36, %v2156_v32  ;;  %v2180_v9 = vadd.f32 %v2179_v37, %v2178_v33  ;;  %v2159_v39 = vpop.f32.mrb[10].mxu0  ;;  %v2181_v40 = vpop.f32.mrb[10].mxu1 }
 0x359   :  { %v2160_v41 = vpop.f32.mrb[11].mxu0  ;;  %v2182_v42 = vpop.f32.mrb[11].mxu1 }
 0x35a   :  { %v1851_v43 = vadd.f32 %v2158_v38, %v2107_v34 }
 0x35c   :  { %v1891_v44 = vadd.f32 %v2180_v9, %v1851_v43 }
 0x35e   :  { %1896 = vst [vmem:[#allocation10] sm:$0x3] %v1891_v44 }
 0x35f   :  { %2624 = shalt.err (!%p2621_p8)
}
 0x360   :  { %s2625_s10 = scalar_lea.hbm %s2811_s7, 32 }
 0x361   :  { %p2626_p9 = scmp.ne.s32.totalorder %s2811_s7, %s2625_s10  ;;  %p2629_p10 = scmp.lt.u32.totalorder %s2625_s10, %s2811_s7 }
 0x363   :  { %p2631_p11 = pnand %p2629_p10, %p2626_p9 }
 0x365   :  { %2634 = shalt.err (!%p2631_p11)
}
 0x366   :  { %1906 = dma.vmem_to_hbm [thread:$0]  %s1904_s30, 32, %s2811_s7, [#allocation4]  }
 0x367   :  { %2641 = dma.done.wait [#allocation4], 32  }
 0x368   :  { %2642 = vsyncadd [#allocation4], 4294967264 }
 0x369   :  { %1910 = vsyncpa [#allocation3], 1 }
 0x36a   :  { %1911 = vsyncpa [#allocation6], 1 }
 0x36b   :  { %1912 = vsyncpa [#allocation9], 1 }
 0x36c   :  { %1913 = vsyncpa [#allocation4], 1 }

</bundles_post_ra>
